<compile_context>
chip_gen: v7x
topology: tpu7x:2x2x1
jax: 0.10.0
libtpu: 0.0.40
codegen_flags: <defaults>
</compile_context>

<pallas_src>
import functools
import math

import jax
import jax.numpy as jnp
from jax.experimental import pallas as pl
from jax.experimental.pallas import tpu as pltpu

_BN_EPS = 1e-5
_TM_CAP = 512  # max rows per matmul tile (review: halves weight re-streaming vs 256)


# ----------------------------------------------------------------------------------------------
# Pallas kernels
# ----------------------------------------------------------------------------------------------
def _mm_kernel(a_ref, w_ref, b_ref, o_ref, acc_ref, *, relu):
    """Tiled bf16 matmul, f32 accumulation, fused shift (+ optional ReLU) epilogue."""
    @pl.when(pl.program_id(2) == 0)
    def _():
        acc_ref[...] = jnp.zeros_like(acc_ref)

    acc_ref[...] += jnp.dot(a_ref[...], w_ref[...], preferred_element_type=jnp.float32)

    @pl.when(pl.program_id(2) == pl.num_programs(2) - 1)
    def _():
        y = acc_ref[...] + b_ref[...]
        if relu:
            y = jnp.maximum(y, 0.0)
        o_ref[...] = y.astype(o_ref.dtype)


def _mm_res_kernel(a_ref, w_ref, b_ref, r_ref, o_ref, acc_ref, *, relu):
    """Same as _mm_kernel but with a fused residual add (bf16 operand, f32 math) in the epilogue."""
    @pl.when(pl.program_id(2) == 0)
    def _():
        acc_ref[...] = jnp.zeros_like(acc_ref)

    acc_ref[...] += jnp.dot(a_ref[...], w_ref[...], preferred_element_type=jnp.float32)

    @pl.when(pl.program_id(2) == pl.num_programs(2) - 1)
    def _():
        y = acc_ref[...] + b_ref[...] + r_ref[...].astype(jnp.float32)
        if relu:
            y = jnp.maximum(y, 0.0)
        o_ref[...] = y.astype(o_ref.dtype)


# ----------------------------------------------------------------------------------------------
# Pallas wrappers
# ----------------------------------------------------------------------------------------------
def _round_up(n, m):
    return ((n + m - 1) // m) * m


def _pick_tile(dim, candidates):
    for c in candidates:
        if dim % c == 0:
            return c
    return candidates[-1]


@functools.lru_cache(maxsize=1)
def _vmem_ceiling_bytes():
    """Generation-aware VMEM ceiling (leave headroom for compiler scratch)."""
    cap = 64 * 1024 * 1024  # conservative fallback: safe on v7x (64 MiB physical)
    try:
        info = pltpu.get_tpu_info()
        cap = int(getattr(info, "vmem_capacity_bytes", cap))
    except Exception:
        pass
    return int(min(cap * 3 // 4, 96 * 1024 * 1024))


@functools.partial(jax.jit, static_argnames=("relu",))
def _matmul_fused(a, wm, shift, residual, relu):
    """out(bf16) = epilogue(a @ wm + shift (+ residual)).  a:(M,K), wm:(Kp,Np) bf16 pre-folded."""
    M, K = a.shape
    Kp, Np = wm.shape

    Mp = _round_up(max(M, 16), 16)
    if Mp > _TM_CAP:
        tm = _TM_CAP
        Mp = _round_up(M, _TM_CAP)
    else:
        tm = Mp
    # Full MXU width on v6e/v7x; v5e (4x128 MXU) is neutral.  Megacore parallelism comes
    # from the (parallel) M axis, not from splitting N.
    tn = 256 if Np >= 256 else 128
    tk = _pick_tile(Kp, (2048, 1024, 512, 256, 128))

    a_p = jnp.pad(a.astype(jnp.bfloat16), ((0, Mp - M), (0, Kp - K)))
    grid = (Mp // tm, Np // tn, Kp // tk)

    in_specs = [
        pl.BlockSpec((tm, tk), lambda i, j, k: (i, k)),
        pl.BlockSpec((tk, tn), lambda i, j, k: (k, j)),
        pl.BlockSpec((1, tn), lambda i, j, k: (0, j)),
    ]
    args = [a_p, wm, shift]
    has_res = residual is not None
    if has_res:
        r_p = jnp.pad(residual.astype(jnp.bfloat16),
                      ((0, Mp - M), (0, Np - residual.shape[1])))
        in_specs.append(pl.BlockSpec((tm, tn), lambda i, j, k: (i, j)))
        args.append(r_p)
        kernel = functools.partial(_mm_res_kernel, relu=relu)
    else:
        kernel = functools.partial(_mm_kernel, relu=relu)

    # VMEM budget: double-buffered a/w/shift tiles, bf16 out (+bf16 residual) + f32 accumulator.
    est = 2 * (tm * tk * 2 + tk * tn * 2 + tm * tn * 2 + tn * 4) + tm * tn * 4
    if has_res:
        est += 2 * tm * tn * 2
    vmem_limit = int(min(max(2 * est, 32 * 1024 * 1024), _vmem_ceiling_bytes()))

    out = pl.pallas_call(
        kernel,
        out_shape=jax.ShapeDtypeStruct((Mp, Np), jnp.bfloat16),
        grid=grid,
        in_specs=in_specs,
        out_specs=pl.BlockSpec((tm, tn), lambda i, j, k: (i, j)),
        scratch_shapes=[pltpu.VMEM((tm, tn), jnp.float32)],
        compiler_params=pltpu.CompilerParams(
            dimension_semantics=("parallel", "parallel", "arbitrary"),
            vmem_limit_bytes=vmem_limit),
    )(*args)
    return out


# ----------------------------------------------------------------------------------------------
# JAX glue: im2col, conv wrapper, pooling, bilinear resize
# ----------------------------------------------------------------------------------------------
def _im2col(x, kh, kw, stride, padding, dilation):
    """x: NHWC (bf16) -> (n, oh, ow, kh*kw, c) patches (tap-major, then channel)."""
    n, h, w, c = x.shape
    xp = jnp.pad(x, ((0, 0), (padding, padding), (padding, padding), (0, 0)))
    hp, wp = h + 2 * padding, w + 2 * padding
    oh = (hp - dilation * (kh - 1) - 1) // stride + 1
    ow = (wp - dilation * (kw - 1) - 1) // stride + 1
    cols = []
    for i in range(kh):
        for j in range(kw):
            y0 = i * dilation
            x0 = j * dilation
            cols.append(xp[:, y0:y0 + stride * (oh - 1) + 1:stride,
                           x0:x0 + stride * (ow - 1) + 1:stride, :])
    patches = jnp.stack(cols, axis=3)  # (n, oh, ow, kk, c)
    return patches, oh, ow


def conv_prepped(x, cp, stride=1, padding=0, dilation=1, relu=False, residual=None):
    """Conv with pre-folded BN (scale in weights, shift as bias), optional fused residual+ReLU.

    Activations are bf16 end-to-end; the im2col patch tensor is produced directly in bf16.
    """
    kh, kw, cin, cout = cp["kh"], cp["kw"], cp["cin"], cp["cout"]
    n = x.shape[0]
    if kh == 1 and kw == 1 and stride == 1 and padding == 0:
        oh, ow = x.shape[1], x.shape[2]
        a = x.reshape(n * oh * ow, cin)
    else:
        patches, oh, ow = _im2col(x, kh, kw, stride, padding, dilation)
        a = patches.reshape(n * oh * ow, kh * kw * cin)
    res = residual.reshape(n * oh * ow, cout) if residual is not None else None
    y = _matmul_fused(a, cp["wm"], cp["shift"], res, relu=relu)
    return y[:n * oh * ow, :cout].reshape(n, oh, ow, cout)


def max_pool_3x3_s2(x):
    """3x3/stride-2/pad-1 max pool as a 9-tap jnp.maximum tree (bandwidth-trivial; per review
    this avoids a half-lane-utilization Pallas launch on the 64-channel conv1 output)."""
    n, h, w, c = x.shape
    xp = jnp.pad(x, ((0, 0), (1, 1), (1, 1), (0, 0)), constant_values=float("-inf"))
    oh = (h + 2 - 3) // 2 + 1
    ow = (w + 2 - 3) // 2 + 1
    out = None
    for i in range(3):
        for j in range(3):
            tap = xp[:, i:i + 2 * (oh - 1) + 1:2, j:j + 2 * (ow - 1) + 1:2, :]
            out = tap if out is None else jnp.maximum(out, tap)
    return out


def bilinear_resize_nhwc(x, out_h, out_w):
    """F.interpolate(mode='bilinear', align_corners=False) semantics."""
    n, h, w, c = x.shape
    if (h, w) == (out_h, out_w):
        return x
    x = x.astype(jnp.float32)
    sy = (jnp.arange(out_h, dtype=jnp.float32) + 0.5) * (h / out_h) - 0.5
    sx = (jnp.arange(out_w, dtype=jnp.float32) + 0.5) * (w / out_w) - 0.5
    sy = jnp.maximum(sy, 0.0)
    sx = jnp.maximum(sx, 0.0)
    y0 = jnp.minimum(jnp.floor(sy).astype(jnp.int32), h - 1)
    x0 = jnp.minimum(jnp.floor(sx).astype(jnp.int32), w - 1)
    y1 = jnp.minimum(y0 + 1, h - 1)
    x1 = jnp.minimum(x0 + 1, w - 1)
    wy = (sy - y0.astype(jnp.float32))[None, :, None, None]
    wx = (sx - x0.astype(jnp.float32))[None, None, :, None]
    xy0 = x[:, y0, :, :]
    xy1 = x[:, y1, :, :]
    v00 = xy0[:, :, x0, :]
    v01 = xy0[:, :, x1, :]
    v10 = xy1[:, :, x0, :]
    v11 = xy1[:, :, x1, :]
    return (1.0 - wy) * ((1.0 - wx) * v00 + wx * v01) + wy * ((1.0 - wx) * v10 + wx * v11)


# ----------------------------------------------------------------------------------------------
# Deterministic parameter generation (shapes of deeplabv3_resnet50(num_classes=1))
# ----------------------------------------------------------------------------------------------
class ParamGen:
    def __init__(self, seed=0):
        self._key = jax.random.PRNGKey(seed)
        self._n = 0

    def _next(self):
        self._n += 1
        return jax.random.fold_in(self._key, self._n)

    def conv(self, cout, cin, kh, kw):
        fan_in = cin * kh * kw
        return (jax.random.normal(self._next(), (cout, cin, kh, kw), jnp.float32)
                * math.sqrt(2.0 / fan_in))

    def bias(self, cout, fan_in):
        bound = 1.0 / math.sqrt(fan_in)
        return jax.random.uniform(self._next(), (cout,), jnp.float32, -bound, bound)

    def bn(self, c):
        return {"gamma": jnp.ones((c,), jnp.float32),
                "beta": jnp.zeros((c,), jnp.float32),
                "mean": jnp.zeros((c,), jnp.float32),
                "var": jnp.ones((c,), jnp.float32)}


def build_params(seed=0):
    pg = ParamGen(seed)
    params = {}
    params["conv1"] = {"w": pg.conv(64, 3, 7, 7), "bn": pg.bn(64)}

    # ResNet-50 layers with replace_stride_with_dilation=[False, True, True] (output stride 8)
    inplanes = 64
    dilation = 1
    layer_cfg = [("layer1", 64, 3, 1, False),
                 ("layer2", 128, 4, 2, False),
                 ("layer3", 256, 6, 2, True),
                 ("layer4", 512, 3, 2, True)]
    for name, planes, blocks, stride, dilate in layer_cfg:
        prev_dil = dilation
        s = stride
        if dilate:
            dilation *= s
            s = 1
        layer = []
        need_down = (s != 1) or (inplanes != planes * 4)
        first = {
            "conv1": {"w": pg.conv(planes, inplanes, 1, 1), "bn": pg.bn(planes)},
            "conv2": {"w": pg.conv(planes, planes, 3, 3), "bn": pg.bn(planes)},
            "conv3": {"w": pg.conv(planes * 4, planes, 1, 1), "bn": pg.bn(planes * 4)},
            "stride": s, "dilation": prev_dil,
        }
        if need_down:
            first["down"] = {"w": pg.conv(planes * 4, inplanes, 1, 1), "bn": pg.bn(planes * 4)}
        layer.append(first)
        inplanes = planes * 4
        for _ in range(1, blocks):
            layer.append({
                "conv1": {"w": pg.conv(planes, inplanes, 1, 1), "bn": pg.bn(planes)},
                "conv2": {"w": pg.conv(planes, planes, 3, 3), "bn": pg.bn(planes)},
                "conv3": {"w": pg.conv(planes * 4, planes, 1, 1), "bn": pg.bn(planes * 4)},
                "stride": 1, "dilation": dilation,
            })
        params[name] = layer

    # DeepLabHead: ASPP(2048, [12,24,36]) + 3x3 conv + BN + ReLU + 1x1 conv -> num_classes=1
    params["aspp"] = {
        "b0": {"w": pg.conv(256, 2048, 1, 1), "bn": pg.bn(256)},
        "b1": {"w": pg.conv(256, 2048, 3, 3), "bn": pg.bn(256)},
        "b2": {"w": pg.conv(256, 2048, 3, 3), "bn": pg.bn(256)},
        "b3": {"w": pg.conv(256, 2048, 3, 3), "bn": pg.bn(256)},
        "pool": {"w": pg.conv(256, 2048, 1, 1), "bn": pg.bn(256)},
        "project": {"w": pg.conv(256, 5 * 256, 1, 1), "bn": pg.bn(256)},
    }
    params["head"] = {
        "conv": {"w": pg.conv(256, 256, 3, 3), "bn": pg.bn(256)},
        "cls_w": pg.conv(1, 256, 1, 1),
        "cls_b": pg.bias(1, 256),
    }
    return params


# ----------------------------------------------------------------------------------------------
# One-time weight preparation: BN fold + transpose + pad + bf16 cast (no per-call weight work)
# ----------------------------------------------------------------------------------------------
def _bn_scale_shift(bn):
    scale = bn["gamma"] / jnp.sqrt(bn["var"] + _BN_EPS)
    shift = bn["beta"] - bn["mean"] * scale
    return scale, shift


def _pack_matmul(wm, shift, kh, kw, cin, cout):
    """Pad a (K, cout) f32 weight matrix / shift to 128-multiples and cast weights to bf16."""
    K = wm.shape[0]
    Kp = _round_up(K, 128)
    Np = _round_up(cout, 128)
    wm_p = jnp.zeros((Kp, Np), jnp.float32).at[:K, :cout].set(wm).astype(jnp.bfloat16)
    sh_p = jnp.zeros((1, Np), jnp.float32).at[0, :cout].set(shift)
    return {"wm": wm_p, "shift": sh_p, "kh": kh, "kw": kw, "cin": cin, "cout": cout}


def _prep_conv(w_oihw, bn=None, bias=None):
    cout, cin, kh, kw = w_oihw.shape
    K = kh * kw * cin
    if bn is not None:
        scale, shift = _bn_scale_shift(bn)
    else:
        scale = jnp.ones((cout,), jnp.float32)
        shift = bias if bias is not None else jnp.zeros((cout,), jnp.float32)
    wm = jnp.transpose(w_oihw, (2, 3, 1, 0)).reshape(K, cout) * scale[None, :]
    return _pack_matmul(wm, shift, kh, kw, cin, cout)


def _prep_aspp_b0_b1(b0, b1):
    """Fuse ASPP's 1x1 branch into the rate-12 3x3 branch (shared A matrix, wide-N matmul).

    The center tap of the 3x3 im2col (padding == dilation) is exactly x, so the 1x1 weight
    can be embedded in the rows of the center tap with zeros elsewhere.
    """
    w1, w0 = b1["w"], b0["w"]
    c1, cin, kh, kw = w1.shape          # 256, 2048, 3, 3
    c0 = w0.shape[0]                    # 256
    s1, sh1 = _bn_scale_shift(b1["bn"])
    s0, sh0 = _bn_scale_shift(b0["bn"])
    K = kh * kw * cin
    wm = jnp.zeros((K, c0 + c1), jnp.float32)
    # columns [:c0] = 1x1 branch, placed on the center tap (tap index 4 of 9)
    wm = wm.at[4 * cin:5 * cin, :c0].set(jnp.transpose(w0[:, :, 0, 0]) * s0[None, :])
    # columns [c0:] = rate-12 3x3 branch
    wm = wm.at[:, c0:].set(jnp.transpose(w1, (2, 3, 1, 0)).reshape(K, c1) * s1[None, :])
    shift = jnp.concatenate([sh0, sh1])
    cp = _pack_matmul(wm, shift, kh, kw, cin, c0 + c1)
    cp["split"] = c0
    return cp


def _prep_aspp_project(project):
    """Split the 1x1 projection (1280->256) into the 1024-channel branch part (Pallas matmul)
    and the 256-channel global-pool part (tiny per-batch matmul folded in via the residual)."""
    pw = project["w"]                                  # (256, 1280, 1, 1)
    scale, shift = _bn_scale_shift(project["bn"])
    w_all = jnp.transpose(pw[:, :, 0, 0]) * scale[None, :]   # (1280, 256), BN scale folded
    k_main = 4 * 256
    main = _pack_matmul(w_all[:k_main], shift, 1, 1, k_main, 256)
    pool_w = w_all[k_main:]                            # (256, 256) f32
    return main, pool_w


def prepare_params(raw):
    prep = {"conv1": _prep_conv(raw["conv1"]["w"], raw["conv1"]["bn"])}
    for name in ("layer1", "layer2", "layer3", "layer4"):
        blocks = []
        for bp in raw[name]:
            nb = {"conv1": _prep_conv(bp["conv1"]["w"], bp["conv1"]["bn"]),
                  "conv2": _prep_conv(bp["conv2"]["w"], bp["conv2"]["bn"]),
                  "conv3": _prep_conv(bp["conv3"]["w"], bp["conv3"]["bn"]),
                  "stride": bp["stride"], "dilation": bp["dilation"]}
            if "down" in bp:
                nb["down"] = _prep_conv(bp["down"]["w"], bp["down"]["bn"])
            blocks.append(nb)
        prep[name] = blocks
    asp = raw["aspp"]
    project_main, project_pool_w = _prep_aspp_project(asp["project"])
    prep["aspp"] = {
        "b0b1": _prep_aspp_b0_b1(asp["b0"], asp["b1"]),
        "b2": _prep_conv(asp["b2"]["w"], asp["b2"]["bn"]),
        "b3": _prep_conv(asp["b3"]["w"], asp["b3"]["bn"]),
        "pool": _prep_conv(asp["pool"]["w"], asp["pool"]["bn"]),
        "project_main": project_main,
        "project_pool_w": project_pool_w,
    }
    hd = raw["head"]
    prep["head"] = {
        "conv": _prep_conv(hd["conv"]["w"], hd["conv"]["bn"]),
        "cls_w": hd["cls_w"][:, :, 0, 0],   # (1, 256)
        "cls_b": hd["cls_b"],               # (1,)
    }
    return prep


# ----------------------------------------------------------------------------------------------
# Forward pass
# ----------------------------------------------------------------------------------------------
def _bottleneck(x, bp):
    out = conv_prepped(x, bp["conv1"], relu=True)
    out = conv_prepped(out, bp["conv2"], stride=bp["stride"], padding=bp["dilation"],
                       dilation=bp["dilation"], relu=True)
    if "down" in bp:
        identity = conv_prepped(x, bp["down"], stride=bp["stride"], relu=False)
    else:
        identity = x
    # conv3 + BN + residual add + ReLU fused into one matmul epilogue
    return conv_prepped(out, bp["conv3"], relu=True, residual=identity)


def deeplabv3_forward(prep, x_nchw):
    """Returns output['out'] of DeepLabV3-ResNet50 (num_classes=1), NCHW, f32."""
    n, _, in_h, in_w = x_nchw.shape
    # bf16 activations end-to-end; cast the source once (before im2col of conv1).
    x = jnp.transpose(x_nchw, (0, 2, 3, 1)).astype(jnp.bfloat16)  # NHWC

    # Backbone (IntermediateLayerGetter up to layer4 -> 'out')
    x = conv_prepped(x, prep["conv1"], stride=2, padding=3, relu=True)
    x = max_pool_3x3_s2(x)
    for name in ("layer1", "layer2", "layer3", "layer4"):
        for bp in prep[name]:
            x = _bottleneck(x, bp)

    # ASPP: 1x1 branch fused into the rate-12 branch; rates 24/36 separate; the global-pool
    # branch is folded into the projection as a per-batch additive term (no 1280-ch concat).
    asp = prep["aspp"]
    h, w = x.shape[1], x.shape[2]
    y01 = conv_prepped(x, asp["b0b1"], padding=12, dilation=12, relu=True)   # (n,h,w,512)
    b2 = conv_prepped(x, asp["b2"], padding=24, dilation=24, relu=True)      # (n,h,w,256)
    b3 = conv_prepped(x, asp["b3"], padding=36, dilation=36, relu=True)      # (n,h,w,256)

    gp = jnp.mean(x.astype(jnp.float32), axis=(1, 2), keepdims=True)         # AdaptiveAvgPool2d(1)
    gp = conv_prepped(gp, asp["pool"], relu=True)                            # (n,1,1,256)
    # Pool branch's contribution to the (BN-scale-folded) projection: a per-batch 256-vector,
    # broadcast spatially (bilinear upsample from 1x1 == broadcast) and added via the fused
    # residual epilogue of the projection matmul.
    pool_contrib = jnp.einsum("nc,co->no", gp[:, 0, 0, :].astype(jnp.float32),
                              asp["project_pool_w"])                         # (n,256) f32
    res = jnp.broadcast_to(pool_contrib[:, None, None, :], (n, h, w, 256)).astype(jnp.bfloat16)

    a_cat = jnp.concatenate([y01, b2, b3], axis=-1)                          # (n,h,w,1024) bf16
    y = conv_prepped(a_cat, asp["project_main"], relu=True, residual=res)    # Dropout(0.5)->id

    # Rest of DeepLabHead
    hd = prep["head"]
    y = conv_prepped(y, hd["conv"], padding=1, relu=True)
    # 1x1 classifier with a single output channel: plain VPU reduction (no 128-padded MXU launch)
    y = jnp.einsum("nhwc,oc->nhwo", y, hd["cls_w"]) + hd["cls_b"]

    # Final bilinear upsample to input resolution, return NCHW f32
    y = bilinear_resize_nhwc(y, in_h, in_w)
    return jnp.transpose(y, (0, 3, 1, 2)).astype(jnp.float32)


# ----------------------------------------------------------------------------------------------
if __name__ == "__main__":
    key = jax.random.PRNGKey(0)
    x = jax.random.normal(key, (2, 3, 16, 16), jnp.float32)   # NCHW, like the PyTorch module
    params = prepare_params(build_params(seed=0))

    out = deeplabv3_forward(params, x)
    out = jax.block_until_ready(out)

    assert out.shape == (2, 1, 16, 16), out.shape
    assert out.dtype == jnp.float32
    assert bool(jnp.all(jnp.isfinite(out)))
    print("KERNEL_OK")
</pallas_src>

<mosaic_0001>
module attributes {stable_mosaic.version = 11 : i64} {
  func.func @_mm_kernel(%arg0: i32, %arg1: i32, %arg2: i32, %arg3: memref<128x256xbf16, #tpu.memory_space<vmem>>, %arg4: memref<256x128xbf16, #tpu.memory_space<vmem>>, %arg5: memref<1x128xf32, #tpu.memory_space<vmem>>, %arg6: memref<128x128xbf16, #tpu.memory_space<vmem>>, %arg7: memref<128x128xf32, #tpu.memory_space<vmem>>) attributes {dimension_semantics = [#tpu.dimension_semantics<parallel>, #tpu.dimension_semantics<parallel>, #tpu.dimension_semantics<arbitrary>], iteration_bounds = array<i64: 1, 1, 1>, scalar_prefetch = 0 : i64, scratch_operands = 1 : i64, tpu.core_type = #tpu.core_type<tc>, window_params = [{transform_indices = @transform_0, window_bounds = array<i64: 128, 256>}, {transform_indices = @transform_1, window_bounds = array<i64: 256, 128>}, {transform_indices = @transform_2, window_bounds = array<i64: 1, 128>}, {transform_indices = @transform_3, window_bounds = array<i64: 128, 128>}]} {
    %c0_i32 = arith.constant 0 : i32
    %0 = arith.cmpi eq, %arg2, %c0_i32 : i32
    %1 = arith.extui %0 : i1 to i32
    %c0_i32_0 = arith.constant 0 : i32
    %2 = arith.cmpi ne, %1, %c0_i32_0 : i32
    scf.if %2 {
      %cst_10 = arith.constant 0.000000e+00 : f32
      %12 = vector.broadcast %cst_10 : f32 to vector<128x128xf32>
      %c0_11 = arith.constant 0 : index
      %c0_12 = arith.constant 0 : index
      %13 = vector.load %arg7[%c0_11, %c0_12] : memref<128x128xf32, #tpu.memory_space<vmem>>, vector<128x128xf32>
      tpu.vector_store %arg7[%c0_11, %c0_12], %12 {strides = array<i32>} : memref<128x128xf32, #tpu.memory_space<vmem>>, vector<128x128xf32>,
    } else {
    }
    %c0 = arith.constant 0 : index
    %c0_1 = arith.constant 0 : index
    %3 = vector.load %arg7[%c0, %c0_1] : memref<128x128xf32, #tpu.memory_space<vmem>>, vector<128x128xf32>
    %c0_2 = arith.constant 0 : index
    %c0_3 = arith.constant 0 : index
    %4 = vector.load %arg3[%c0_2, %c0_3] : memref<128x256xbf16, #tpu.memory_space<vmem>>, vector<128x256xbf16>
    %c0_4 = arith.constant 0 : index
    %c0_5 = arith.constant 0 : index
    %5 = vector.load %arg4[%c0_4, %c0_5] : memref<256x128xbf16, #tpu.memory_space<vmem>>, vector<256x128xbf16>
    %cst = arith.constant dense<0.000000e+00> : vector<128x128xf32>
    %6 = tpu.matmul %4, %5, %cst {dimension_numbers = #tpu.dot_dimension_numbers<[1], [0], [0], [1], [0, 0, 1, 1], [], []>} : vector<128x256xbf16>, vector<256x128xbf16>, vector<128x128xf32> -> vector<128x128xf32>
    %7 = arith.addf %3, %6 : vector<128x128xf32>
    %c0_6 = arith.constant 0 : index
    %c0_7 = arith.constant 0 : index
    %8 = vector.load %arg7[%c0_6, %c0_7] : memref<128x128xf32, #tpu.memory_space<vmem>>, vector<128x128xf32>
    tpu.vector_store %arg7[%c0_6, %c0_7], %7 {strides = array<i32>} : memref<128x128xf32, #tpu.memory_space<vmem>>, vector<128x128xf32>,
    %c0_i32_8 = arith.constant 0 : i32
    %9 = arith.cmpi eq, %arg2, %c0_i32_8 : i32
    %10 = arith.extui %9 : i1 to i32
    %c0_i32_9 = arith.constant 0 : i32
    %11 = arith.cmpi ne, %10, %c0_i32_9 : i32
    scf.if %11 {
      %c0_10 = arith.constant 0 : index
      %c0_11 = arith.constant 0 : index
      %12 = vector.load %arg7[%c0_10, %c0_11] : memref<128x128xf32, #tpu.memory_space<vmem>>, vector<128x128xf32>
      %c0_12 = arith.constant 0 : index
      %c0_13 = arith.constant 0 : index
      %13 = vector.load %arg5[%c0_12, %c0_13] : memref<1x128xf32, #tpu.memory_space<vmem>>, vector<1x128xf32>
      %14 = vector.broadcast %13 : vector<1x128xf32> to vector<128x128xf32>
      %15 = arith.addf %12, %14 : vector<128x128xf32>
      %cst_14 = arith.constant 0.000000e+00 : f32
      %16 = vector.broadcast %cst_14 : f32 to vector<128x128xf32>
      %17 = arith.maximumf %15, %16 : vector<128x128xf32>
      %18 = arith.truncf %17 : vector<128x128xf32> to vector<128x128xbf16>
      %c0_15 = arith.constant 0 : index
      %c0_16 = arith.constant 0 : index
      %19 = vector.load %arg6[%c0_15, %c0_16] : memref<128x128xbf16, #tpu.memory_space<vmem>>, vector<128x128xbf16>
      tpu.vector_store %arg6[%c0_15, %c0_16], %18 {strides = array<i32>} : memref<128x128xbf16, #tpu.memory_space<vmem>>, vector<128x128xbf16>,
    } else {
    }
    return
  }
  func.func @transform_0(%arg0: i32, %arg1: i32, %arg2: i32) -> (i32, i32) {
    %c0_i32 = arith.constant 0 : i32
    return %arg0, %arg2 : i32, i32
  }
  func.func @transform_1(%arg0: i32, %arg1: i32, %arg2: i32) -> (i32, i32) {
    %c0_i32 = arith.constant 0 : i32
    return %arg2, %arg1 : i32, i32
  }
  func.func @transform_2(%arg0: i32, %arg1: i32, %arg2: i32) -> (i32, i32) {
    %c0_i32 = arith.constant 0 : i32
    %c0_i32_0 = arith.constant 0 : i32
    return %c0_i32, %arg1 : i32, i32
  }
  func.func @transform_3(%arg0: i32, %arg1: i32, %arg2: i32) -> (i32, i32) {
    %c0_i32 = arith.constant 0 : i32
    return %arg0, %arg1 : i32, i32
  }
}

</mosaic_0001>

<bundles_post_ra>
// kernel: _matmul_fused.1
= control target key start
LH: loop header
LB: loop body
LE: loop exit
PB: predicated region body
PF: predicated region fallthrough
CT: control target
= control target key end

     0   :  { %s970_s0 = inlined_call_operand.vmem [shape: bf16[128,256], index: 0, kind: input, shape index: {}]   ;;  %s971_s1 = inlined_call_operand.vmem [shape: bf16[256,128], index: 1, kind: input, shape index: {}]   ;;  %s972_s2 = inlined_call_operand.vmem [shape: f32[1,128], index: 2, kind: input, shape index: {}]   ;;  %s973_s3 = inlined_call_operand.hbm [shape: bf16[128,128], index: 3, kind: output, shape index: {}]  }
   0x1   :  { %v754_v0 = vld [vmem:[%s971_s1 + $0x40] sm:$0xff]   ;;  %v756_v2 = vld [vmem:[%s971_s1 + $0x48] sm:$0xff]   ;;  %v758_v4 = vld [vmem:[%s971_s1 + $0x50] sm:$0xff]  }
   0x2   :  { %v755_v1 = vld [vmem:[%s971_s1] sm:$0xff]   ;;  %671 = vmatprep.subr.bf16.mxu0 %v754_v0  ;;  %735 = vmatprep.subr.bf16.mxu1 %v754_v0  ;;  %v757_v3 = vld [vmem:[%s971_s1 + $0x8] sm:$0xff]   ;;  %v759_v5 = vld [vmem:[%s971_s1 + $0x10] sm:$0xff]  }
   0x3   :  { %672 = vmatpush3.bf16.msra.mxu0 %v755_v1  ;;  %743 = vmatpush3.bf16.msra.mxu1 %v755_v1  ;;  %v760_v6 = vld [vmem:[%s971_s1 + $0x58] sm:$0xff]   ;;  %v762_v8 = vld [vmem:[%s971_s1 + $0x60] sm:$0xff]   ;;  %v764_v10 = vld [vmem:[%s971_s1 + $0x68] sm:$0xff]  }
   0x4   :  { %673 = vmatprep.subr.bf16.mxu0 %v756_v2  ;;  %736 = vmatprep.subr.bf16.mxu1 %v756_v2  ;;  %v761_v7 = vld [vmem:[%s971_s1 + $0x18] sm:$0xff]   ;;  %v763_v9 = vld [vmem:[%s971_s1 + $0x20] sm:$0xff]   ;;  %v765_v13 = vld [vmem:[%s971_s1 + $0x28] sm:$0xff]  }
   0x5   :  { %v772_v11 = vld [vmem:[%s970_s0 + $0x4] ss:$8 sps:$4 sm:$0xff]   ;;  %v766_v14 = vld [vmem:[%s971_s1 + $0x70] sm:$0xff]   ;;  %v768_v16 = vld [vmem:[%s971_s1 + $0x78] sm:$0xff]  }
   0x6   :  { %v775_v12 = vld [vmem:[%s970_s0 + $0x44] ss:$8 sps:$4 sm:$0xff]   ;;  %308 = vmatprep.mubr.bf16.mxu0 %v772_v11  ;;  %v767_v15 = vld [vmem:[%s971_s1 + $0x30] sm:$0xff]  }
   0x7   :  { %674 = vmatpush3.bf16.msra.mxu0 %v757_v3  ;;  %744 = vmatpush3.bf16.msra.mxu1 %v757_v3 }
   0x8   :  { %675 = vmatprep.subr.bf16.mxu0 %v758_v4  ;;  %737 = vmatprep.subr.bf16.mxu1 %v758_v4 }
   0x9   :  { %340 = vmatprep.mubr.bf16.mxu1 %v775_v12 }
   0xb   :  { %676 = vmatpush3.bf16.msra.mxu0 %v759_v5  ;;  %745 = vmatpush3.bf16.msra.mxu1 %v759_v5 }
   0xc   :  { %677 = vmatprep.subr.bf16.mxu0 %v760_v6  ;;  %738 = vmatprep.subr.bf16.mxu1 %v760_v6 }
   0xf   :  { %678 = vmatpush3.bf16.msra.mxu0 %v761_v7  ;;  %746 = vmatpush3.bf16.msra.mxu1 %v761_v7 }
  0x10   :  { %679 = vmatprep.subr.bf16.mxu0 %v762_v8  ;;  %739 = vmatprep.subr.bf16.mxu1 %v762_v8 }
  0x13   :  { %680 = vmatpush3.bf16.msra.mxu0 %v763_v9  ;;  %747 = vmatpush3.bf16.msra.mxu1 %v763_v9 }
  0x14   :  { %681 = vmatprep.subr.bf16.mxu0 %v764_v10  ;;  %740 = vmatprep.subr.bf16.mxu1 %v764_v10 }
  0x17   :  { %682 = vmatpush3.bf16.msra.mxu0 %v765_v13  ;;  %748 = vmatpush3.bf16.msra.mxu1 %v765_v13 }
  0x18   :  { %683 = vmatprep.subr.bf16.mxu0 %v766_v14  ;;  %741 = vmatprep.subr.bf16.mxu1 %v766_v14 }
  0x19   :  { %8 = vsyncpa [#allocation4], 0  ;;  %v769_v17 = vld [vmem:[%s971_s1 + $0x38] sm:$0xff]   ;;  %v770_v18 = vld [vmem:[%s970_s0] ss:$8 sps:$4 sm:$0xff]  }
  0x1a   :  { %v773_v19 = vld [vmem:[%s970_s0 + $0x40] ss:$8 sps:$4 sm:$0xff]   ;;  %v776_v20 = vld [vmem:[%s970_s0 + $0x14] ss:$8 sps:$4 sm:$0xff]   ;;  %v780_v22 = vld [vmem:[%s970_s0 + $0x10] ss:$8 sps:$4 sm:$0xff]  }
  0x1b   :  { %684 = vmatpush3.bf16.msra.mxu0 %v767_v15  ;;  %749 = vmatpush3.bf16.msra.mxu1 %v767_v15  ;;  %v778_v21 = vld [vmem:[%s970_s0 + $0x54] ss:$8 sps:$4 sm:$0xff]   ;;  %v781_v23 = vld [vmem:[%s970_s0 + $0x50] ss:$8 sps:$4 sm:$0xff]   ;;  %v782_v24 = vld [vmem:[%s970_s0 + $0x24] ss:$8 sps:$4 sm:$0xff]  }
  0x1c   :  { %685 = vmatprep.subr.bf16.mxu0 %v768_v16  ;;  %742 = vmatprep.subr.bf16.mxu1 %v768_v16  ;;  %v784_v25 = vld [vmem:[%s970_s0 + $0x64] ss:$8 sps:$4 sm:$0xff]   ;;  %v786_v26 = vld [vmem:[%s970_s0 + $0x20] ss:$8 sps:$4 sm:$0xff]   ;;  %v788_v28 = vld [vmem:[%s970_s0 + $0x34] ss:$8 sps:$4 sm:$0xff]  }
  0x1d   :  { %v787_v27 = vld [vmem:[%s970_s0 + $0x60] ss:$8 sps:$4 sm:$0xff]   ;;  %v790_v29 = vld [vmem:[%s970_s0 + $0x74] ss:$8 sps:$4 sm:$0xff]   ;;  %v792_v30 = vld [vmem:[%s970_s0 + $0x30] ss:$8 sps:$4 sm:$0xff]  }
  0x1e   :  { %v793_v31 = vld [vmem:[%s970_s0 + $0x70] ss:$8 sps:$4 sm:$0xff]   ;;  %v940_v35 = vld [vmem:[%s972_s2] ss:$0 sm:$0xff]  ;;  %s818_s0 = smov [#allocation3]  }
  0x1f   :  { %686 = vmatpush3.bf16.msra.mxu0 %v769_v17  ;;  %750 = vmatpush3.bf16.msra.mxu1 %v769_v17  ;;  %s548_s2 = sshll.u32 %s818_s0, 4  ;;  %s549_s2 = int_to_ptr.vmem [resolvable:$true] %s548_s2 }
  0x20   :  { %s794_s23 = scalar_lea.vmem %s549_s2, 1024  ;;  %p799_p1 = scmp.lt.s32.totalorder %s549_s2, %s549_s2 }
  0x21   :  { %p795_p0 = scmp.ne.s32.totalorder %s549_s2, %s794_s23  ;;  %p800_p2 = scmp.lt.s32.totalorder %s794_s23, %s794_s23 }
  0x22   :  { %309 = vmatmul.mubr.bf16.vlgmr.msra.gmra.mrb[0].mxu0 %v770_v18  ;;  %341 = vmatmul.mubr.bf16.vlgmr.msra.gmra.mrb[0].mxu1 %v773_v19 }
  0x23   :  { %316 = vmatprep.mubr.bf16.mxu0 %v776_v20  ;;  %348 = vmatprep.mubr.bf16.mxu1 %v778_v21  ;;  %p801_p3 = por %p800_p2, %p799_p1 }
  0x25   :  { %p802_p4 = pnand %p801_p3, %p795_p0 }
  0x2a   :  { %317 = vmatmul.mubr.bf16.gmra.mrb[4].mxu0 %v780_v22  ;;  %349 = vmatmul.mubr.bf16.gmra.mrb[4].mxu1 %v781_v23 }
  0x2b   :  { %324 = vmatprep.mubr.bf16.mxu0 %v782_v24  ;;  %356 = vmatprep.mubr.bf16.mxu1 %v784_v25 }
  0x32   :  { %325 = vmatmul.mubr.bf16.gmra.mrb[8].mxu0 %v786_v26  ;;  %357 = vmatmul.mubr.bf16.gmra.mrb[8].mxu1 %v787_v27 }
  0x33   :  { %332 = vmatprep.mubr.bf16.mxu0 %v788_v28  ;;  %364 = vmatprep.mubr.bf16.mxu1 %v790_v29 }
  0x3a   :  { %333 = vmatmul.mubr.bf16.gmra.mrb[12].mxu0 %v792_v30  ;;  %365 = vmatmul.mubr.bf16.gmra.mrb[12].mxu1 %v793_v31 }
  0xf5   :  { %v687_v32 = vpop.f32.mrb[0].mxu0  ;;  %v711_v33 = vpop.f32.mrb[0].mxu1 }
  0xf6   :  { %v688_v34 = vpop.f32.mrb[1].mxu0  ;;  %v712_v36 = vpop.f32.mrb[1].mxu1 }
  0xf7   :  { %v689_v37 = vadd.f32 %v688_v34, %v687_v32  ;;  %v713_v38 = vadd.f32 %v712_v36, %v711_v33  ;;  %v690_v39 = vpop.f32.mrb[2].mxu0  ;;  %v714_v40 = vpop.f32.mrb[2].mxu1 }
  0xf8   :  { %v691_v41 = vpop.f32.mrb[3].mxu0  ;;  %v715_v42 = vpop.f32.mrb[3].mxu1 }
  0xf9   :  { %v431_v43 = vadd.f32 %v689_v37, %v940_v35  ;;  %v439_v44 = vadd.f32 %v713_v38, %v940_v35  ;;  %v692_v45 = vadd.f32 %v691_v41, %v690_v39  ;;  %v716_v46 = vadd.f32 %v715_v42, %v714_v40 }
  0xfb   :  { %v432_v47 = vadd.f32 %v692_v45, %v940_v35  ;;  %v440_v48 = vadd.f32 %v716_v46, %v940_v35  ;;  %v447_v49 = vmax.f32 %v431_v43, 0.0  ;;  %v455_v50 = vmax.f32 %v439_v44, 0.0 }
  0xfd   :  { %v448_v51 = vmax.f32 %v432_v47, 0.0  ;;  %v456_v52 = vmax.f32 %v440_v48, 0.0  ;;  %v693_v53 = vpop.f32.mrb[4].mxu0  ;;  %v717_v54 = vpop.f32.mrb[4].mxu1 }
  0xfe   :  { %v694_v55 = vpop.f32.mrb[5].mxu0  ;;  %v718_v56 = vpop.f32.mrb[5].mxu1 }
  0xff   :  { %v627_v57 = vpack.c.bf16 %v448_v51, %v447_v49  ;;  %v647_v58 = vpack.c.bf16 %v456_v52, %v455_v50  ;;  %v695_v59 = vadd.f32 %v694_v55, %v693_v53  ;;  %v719_v60 = vadd.f32 %v718_v56, %v717_v54  ;;  %v696_v61 = vpop.f32.mrb[6].mxu0  ;;  %v720_v62 = vpop.f32.mrb[6].mxu1 }
 0x100   :  { %v697_v63 = vpop.f32.mrb[7].mxu0  ;;  %v721_v0 = vpop.f32.mrb[7].mxu1 }
 0x101   :  { %628 = vst [vmem:[#allocation3] sm:$0xff] %v627_v57   ;;  %667 = vst [vmem:[#allocation3 + $0x20] sm:$0xff] %v647_v58   ;;  %v433_v1 = vadd.f32 %v695_v59, %v940_v35  ;;  %v441_v2 = vadd.f32 %v719_v60, %v940_v35  ;;  %v698_v3 = vadd.f32 %v697_v63, %v696_v61 }
 0x102   :  { %v722_v4 = vadd.f32 %v721_v0, %v720_v62 }
 0x103   :  { %v434_v5 = vadd.f32 %v698_v3, %v940_v35  ;;  %v449_v7 = vmax.f32 %v433_v1, 0.0  ;;  %v457_v8 = vmax.f32 %v441_v2, 0.0 }
 0x104   :  { %v442_v6 = vadd.f32 %v722_v4, %v940_v35 }
 0x105   :  { %v450_v9 = vmax.f32 %v434_v5, 0.0  ;;  %v699_v11 = vpop.f32.mrb[8].mxu0  ;;  %v723_v12 = vpop.f32.mrb[8].mxu1 }
 0x106   :  { %v458_v10 = vmax.f32 %v442_v6, 0.0  ;;  %v700_v13 = vpop.f32.mrb[9].mxu0  ;;  %v724_v14 = vpop.f32.mrb[9].mxu1 }
 0x107   :  { %v632_v15 = vpack.c.bf16 %v450_v9, %v449_v7  ;;  %v701_v17 = vadd.f32 %v700_v13, %v699_v11  ;;  %v725_v18 = vadd.f32 %v724_v14, %v723_v12  ;;  %v702_v19 = vpop.f32.mrb[10].mxu0  ;;  %v726_v20 = vpop.f32.mrb[10].mxu1 }
 0x108   :  { %v652_v16 = vpack.c.bf16 %v458_v10, %v457_v8  ;;  %v703_v21 = vpop.f32.mrb[11].mxu0  ;;  %v727_v22 = vpop.f32.mrb[11].mxu1 }
 0x109   :  { %664 = vst [vmem:[#allocation3 + $0x8] sm:$0xff] %v632_v15   ;;  %v435_v23 = vadd.f32 %v701_v17, %v940_v35  ;;  %v443_v24 = vadd.f32 %v725_v18, %v940_v35  ;;  %v704_v25 = vadd.f32 %v703_v21, %v702_v19  ;;  %v728_v26 = vadd.f32 %v727_v22, %v726_v20 }
 0x10a   :  { %668 = vst [vmem:[#allocation3 + $0x28] sm:$0xff] %v652_v16  }
 0x10b   :  { %v436_v27 = vadd.f32 %v704_v25, %v940_v35  ;;  %v444_v28 = vadd.f32 %v728_v26, %v940_v35  ;;  %v451_v29 = vmax.f32 %v435_v23, 0.0  ;;  %v459_v30 = vmax.f32 %v443_v24, 0.0 }
 0x10d   :  { %v452_v31 = vmax.f32 %v436_v27, 0.0  ;;  %v460_v32 = vmax.f32 %v444_v28, 0.0  ;;  %v705_v33 = vpop.f32.mrb[12].mxu0  ;;  %v729_v34 = vpop.f32.mrb[12].mxu1 }
 0x10e   :  { %v706_v36 = vpop.f32.mrb[13].mxu0  ;;  %v730_v37 = vpop.f32.mrb[13].mxu1 }
 0x10f   :  { %v637_v38 = vpack.c.bf16 %v452_v31, %v451_v29  ;;  %v657_v39 = vpack.c.bf16 %v460_v32, %v459_v30  ;;  %v707_v40 = vadd.f32 %v706_v36, %v705_v33  ;;  %v731_v41 = vadd.f32 %v730_v37, %v729_v34  ;;  %v708_v42 = vpop.f32.mrb[14].mxu0  ;;  %v732_v43 = vpop.f32.mrb[14].mxu1 }
 0x110   :  { %v709_v44 = vpop.f32.mrb[15].mxu0  ;;  %v733_v45 = vpop.f32.mrb[15].mxu1 }
 0x111   :  { %665 = vst [vmem:[#allocation3 + $0x10] sm:$0xff] %v637_v38   ;;  %669 = vst [vmem:[#allocation3 + $0x30] sm:$0xff] %v657_v39   ;;  %v437_v46 = vadd.f32 %v707_v40, %v940_v35  ;;  %v445_v47 = vadd.f32 %v731_v41, %v940_v35  ;;  %v710_v48 = vadd.f32 %v709_v44, %v708_v42 }
 0x112   :  { %v734_v49 = vadd.f32 %v733_v45, %v732_v43 }
 0x113   :  { %v438_v50 = vadd.f32 %v710_v48, %v940_v35  ;;  %v453_v52 = vmax.f32 %v437_v46, 0.0  ;;  %v461_v53 = vmax.f32 %v445_v47, 0.0 }
 0x114   :  { %v446_v51 = vadd.f32 %v734_v49, %v940_v35 }
 0x115   :  { %v454_v54 = vmax.f32 %v438_v50, 0.0 }
 0x116   :  { %v462_v55 = vmax.f32 %v446_v51, 0.0 }
 0x117   :  { %v642_v56 = vpack.c.bf16 %v454_v54, %v453_v52 }
 0x118   :  { %v662_v57 = vpack.c.bf16 %v462_v55, %v461_v53 }
 0x119   :  { %666 = vst [vmem:[#allocation3 + $0x18] sm:$0xff] %v642_v56  }
 0x11a   :  { %670 = vst [vmem:[#allocation3 + $0x38] sm:$0xff] %v662_v57  }
 0x11b   :  { %805 = shalt.err (!%p802_p4)
}
 0x11c   :  { %s806_s26 = scalar_lea.hbm %s973_s3, 1024 }
 0x11d   :  { %p807_p5 = scmp.ne.s32.totalorder %s973_s3, %s806_s26  ;;  %p810_p6 = scmp.lt.u32.totalorder %s806_s26, %s973_s3 }
 0x11f   :  { %p812_p7 = pnand %p810_p6, %p807_p5 }
 0x121   :  { %815 = shalt.err (!%p812_p7)
}
 0x122   :  { %s819_s30 = smov 64   ;;  %s820_s4 = smov 4  }
 0x123   :  { %554 = dma.vmem_to_hbm [thread:$0]  %s549_s2, 1024, %s973_s3, [#allocation4], %s819_s30, %s819_s30, %s820_s4  }
 0x124   :  { %816 = dma.done.wait [#allocation4], 1024  }
 0x125   :  { %817 = vsyncadd [#allocation4], 4294966272 }
 0x126   :  { %558 = vsyncpa [#allocation4], 1 }

</bundles_post_ra>
